<compile_context>
chip_gen: v6e
topology: v6e:2x2x1
jax: 0.10.0
libtpu: 0.0.40
codegen_flags: <defaults>
</compile_context>

<pallas_src>
import jax
import jax.numpy as jnp
from jax.experimental import pallas as pl
from jax.experimental.pallas import tpu as pltpu

INPUT_DIM = 1          # required for the is_train=True second pass to be shape-valid
HIDDEN = 64
N_HIDDEN_LAYERS = 3
BATCH = 8
PAD = 128              # lane-dense padding of the hidden dimension
ONE = HIDDEN           # index of the constant-1 lane used to carry biases


def _mlp_kernel(x1_ref, wh_ref, vp_ref, out_ref):
    """Fused 2-pass MLP:  out = max(mlp(mlp(x1)), 0.01).

    x1_ref : [B, 1]        f32
    wh_ref : [4, PAD, PAD] bf16  padded weights ([in, out]); row ONE = bias,
                                 [ONE, ONE] = 1 so the ones-lane propagates.
                                 slabs 0..2 = hidden layers, slab 3 = fused
                                 middle (pass-1 output x pass-2 input).
    vp_ref : [8, PAD]      f32   row0 = w0 (lane ONE = 0)
                                 row1 = b0 (lane ONE = 1)
                                 row2 = wo (lane ONE = bo)
    out_ref: [B, PAD]      f32   lane-dense output (column 0 holds the result)
    """
    w0 = vp_ref[0:1, :]          # [1, PAD]
    b0 = vp_ref[1:2, :]          # [1, PAD]  (carries the constant 1 at lane ONE)
    wo = vp_ref[2:3, :]          # [1, PAD]  (carries bo at lane ONE)

    # Pass-1 input layer (K=1): VPU broadcast outer product, not MXU.
    # Lane ONE becomes exactly 1 and lanes > HIDDEN stay exactly 0.
    h = jnp.maximum(x1_ref[...] * w0 + b0, 0.0)          # [B, PAD] f32

    # 3 hidden layers, fused middle layer, 3 hidden layers again:
    # 7 serial bf16 MXU matmuls, f32 accumulation, biases via the ones-lane.
    for l in (0, 1, 2, 3, 0, 1, 2):
        h = jnp.maximum(
            jnp.dot(h.astype(jnp.bfloat16), wh_ref[l],
                    preferred_element_type=jnp.float32),
            0.0)

    # Dropout(0.9): identity (eval semantics).
    # Output layer (N=1): VPU mul + XLU lane reduction; bo folded at lane ONE.
    pred = jnp.sum(h * wo, axis=-1, keepdims=True)        # [B, 1]
    out_ref[...] = jnp.broadcast_to(jnp.maximum(pred, 0.01), out_ref.shape)


def pack_params(params, pad=PAD):
    """Pack all weights/biases into two pre-padded slabs (built once, reused).

    wh[l] layout (pad x pad):
        [:H, :H]   = layer weight ([in, out])
        [ONE, :H]  = layer bias
        [ONE, ONE] = 1.0   (keeps the ones-lane alive through the layer)
    Slab 3 is the fused middle layer: W_mid = wo @ w0 (rank-1),
    b_mid = bo * w0 + b0, i.e. pass-2's first Linear applied to pass-1's output
    Linear in one matmul.
    """
    (w0, b0), (w1, b1), (w2, b2), (w3, b3), (wo, bo) = params
    H = w1.shape[0]

    def pad_hidden(w, b):
        m = jnp.zeros((pad, pad), jnp.float32)
        m = m.at[:H, :H].set(w)
        m = m.at[ONE, :H].set(b.reshape(-1))
        m = m.at[ONE, ONE].set(1.0)
        return m

    bo_s = bo.reshape(-1)[0]
    w_mid = wo.reshape(H, 1) @ w0.reshape(1, H)           # [H, H] rank-1
    b_mid = bo_s * w0.reshape(-1) + b0.reshape(-1)        # [H]

    wh = jnp.stack([pad_hidden(w1, b1),
                    pad_hidden(w2, b2),
                    pad_hidden(w3, b3),
                    pad_hidden(w_mid, b_mid)]).astype(jnp.bfloat16)

    def row(vals, one_val):
        out = jnp.zeros((pad,), jnp.float32)
        out = out.at[:H].set(vals.reshape(-1))
        out = out.at[ONE].set(one_val)
        return out

    vp = jnp.stack([
        row(w0, 0.0),                          # first-layer weights
        row(b0, 1.0),                          # first-layer bias + ones-lane seed
        row(wo, bo_s),                         # output weights + bo
    ] + [jnp.zeros((pad,), jnp.float32)] * 5)  # pad to 8 sublanes
    return wh, vp


def mlp_forward(x1, x2, x3, wh, vp):
    """x1: [B, input_dim]; x2, x3 unused (see semantics notes above)."""
    del x2, x3
    B = x1.shape[0]
    # NOTE: for real throughput, raise B toward 128 (v5e) / 256 (v6e, v7x) and
    # on v7x add a leading parallel batch grid axis; kernel body is unchanged.
    out = pl.pallas_call(
        _mlp_kernel,
        out_shape=jax.ShapeDtypeStruct((B, PAD), jnp.float32),
        in_specs=[pl.BlockSpec(memory_space=pltpu.MemorySpace.VMEM)] * 3,
        out_specs=pl.BlockSpec(memory_space=pltpu.MemorySpace.VMEM),
        cost_estimate=pl.CostEstimate(flops=1_900_000,
                                      transcendentals=0,
                                      bytes_accessed=140_000),
    )(x1, wh, vp)
    return out[:, :1]            # lane-dense store in-kernel, slice outside


def init_params(key, input_dim=INPUT_DIM, hidden=HIDDEN, layers=N_HIDDEN_LAYERS):
    """Deterministic init mimicking PyTorch Linear (uniform ±1/sqrt(fan_in)).
    Weights stored as [in, out]; biases as [1, out]."""
    dims = [(input_dim, hidden)] + [(hidden, hidden)] * layers + [(hidden, 1)]
    params = []
    for (fan_in, fan_out) in dims:
        key, kw, kb = jax.random.split(key, 3)
        bound = 1.0 / jnp.sqrt(float(fan_in))
        w = jax.random.uniform(kw, (fan_in, fan_out), jnp.float32, -bound, bound)
        b = jax.random.uniform(kb, (1, fan_out), jnp.float32, -bound, bound)
        params.append((w, b))
    return params


def reference_forward(x1, params):
    """Pure-JAX reference mirroring the kernel's precision decisions:
    bf16 weights + bf16 folded biases, f32 accumulation, fused middle layer."""
    (w0, b0), (w1, b1), (w2, b2), (w3, b3), (wo, bo) = params
    bf = jnp.bfloat16
    bo_s = bo.reshape(-1)[0]
    w_mid = wo.reshape(-1, 1) @ w0.reshape(1, -1)
    b_mid = bo_s * w0.reshape(1, -1) + b0

    def hidden_chain(h):
        for (w, b) in ((w1, b1), (w2, b2), (w3, b3)):
            h = jnp.dot(h.astype(bf), w.astype(bf),
                        preferred_element_type=jnp.float32)
            h = jnp.maximum(h + b.astype(bf).astype(jnp.float32), 0.0)
        return h

    h = jnp.maximum(x1 * w0 + b0, 0.0)                    # pass-1 input layer
    h = hidden_chain(h)
    h = jnp.dot(h.astype(bf), w_mid.astype(bf),           # fused middle
                preferred_element_type=jnp.float32)
    h = jnp.maximum(h + b_mid.astype(bf).astype(jnp.float32), 0.0)
    h = hidden_chain(h)
    pred = jnp.sum(h * wo.reshape(1, -1), axis=-1, keepdims=True) + bo_s
    return jnp.maximum(pred, 0.01)


if __name__ == "__main__":
    key = jax.random.PRNGKey(0)
    kp, k1, k2, k3 = jax.random.split(key, 4)

    params = init_params(kp)
    wh, vp = pack_params(params)        # packed once, reusable across calls

    x1 = jax.random.normal(k1, (BATCH, INPUT_DIM), jnp.float32)
    x2 = jax.random.normal(k2, (BATCH, INPUT_DIM), jnp.float32)  # unused (see notes)
    x3 = jax.random.normal(k3, (BATCH, INPUT_DIM), jnp.float32)  # unused (see notes)

    out = jax.block_until_ready(mlp_forward(x1, x2, x3, wh, vp))

    ref = reference_forward(x1, params)
    assert out.shape == (BATCH, 1)
    assert jnp.allclose(out, ref, atol=1e-3, rtol=1e-3), "mismatch vs JAX reference"

    print("KERNEL_OK")
</pallas_src>

<mosaic_0001>
module attributes {stable_mosaic.version = 11 : i64} {
  func.func @_mlp_kernel(%arg0: memref<8x1xf32, #tpu.memory_space<vmem>>, %arg1: memref<4x128x128xbf16, #tpu.memory_space<vmem>>, %arg2: memref<8x128xf32, #tpu.memory_space<vmem>>, %arg3: memref<8x128xf32, #tpu.memory_space<vmem>>) attributes {dimension_semantics = [], scalar_prefetch = 0 : i64, scratch_operands = 0 : i64, tpu.core_type = #tpu.core_type<tc>} {
    %c0 = arith.constant 0 : index
    %c0_0 = arith.constant 0 : index
    %0 = vector.load %arg2[%c0, %c0_0] : memref<8x128xf32, #tpu.memory_space<vmem>>, vector<1x128xf32>
    %c1 = arith.constant 1 : index
    %c0_1 = arith.constant 0 : index
    %1 = vector.load %arg2[%c1, %c0_1] : memref<8x128xf32, #tpu.memory_space<vmem>>, vector<1x128xf32>
    %c2 = arith.constant 2 : index
    %c0_2 = arith.constant 0 : index
    %2 = vector.load %arg2[%c2, %c0_2] : memref<8x128xf32, #tpu.memory_space<vmem>>, vector<1x128xf32>
    %c0_3 = arith.constant 0 : index
    %c0_4 = arith.constant 0 : index
    %3 = vector.load %arg0[%c0_3, %c0_4] : memref<8x1xf32, #tpu.memory_space<vmem>>, vector<8x1xf32>
    %4 = vector.broadcast %3 : vector<8x1xf32> to vector<8x128xf32>
    %5 = vector.broadcast %0 : vector<1x128xf32> to vector<8x128xf32>
    %6 = arith.mulf %4, %5 : vector<8x128xf32>
    %7 = vector.broadcast %1 : vector<1x128xf32> to vector<8x128xf32>
    %8 = arith.addf %6, %7 : vector<8x128xf32>
    %cst = arith.constant 0.000000e+00 : f32
    %9 = vector.broadcast %cst : f32 to vector<8x128xf32>
    %10 = arith.maximumf %8, %9 : vector<8x128xf32>
    %11 = arith.truncf %10 : vector<8x128xf32> to vector<8x128xbf16>
    %c0_5 = arith.constant 0 : index
    %c0_6 = arith.constant 0 : index
    %c0_7 = arith.constant 0 : index
    %12 = vector.load %arg1[%c0_5, %c0_6, %c0_7] : memref<4x128x128xbf16, #tpu.memory_space<vmem>>, vector<1x128x128xbf16>
    %13 = vector.shape_cast %12 : vector<1x128x128xbf16> to vector<128x128xbf16>
    %cst_8 = arith.constant dense<0.000000e+00> : vector<8x128xf32>
    %14 = tpu.matmul %11, %13, %cst_8 {dimension_numbers = #tpu.dot_dimension_numbers<[1], [0], [0], [1], [0, 0, 1, 1], [], []>} : vector<8x128xbf16>, vector<128x128xbf16>, vector<8x128xf32> -> vector<8x128xf32>
    %cst_9 = arith.constant 0.000000e+00 : f32
    %15 = vector.broadcast %cst_9 : f32 to vector<8x128xf32>
    %16 = arith.maximumf %14, %15 : vector<8x128xf32>
    %17 = arith.truncf %16 : vector<8x128xf32> to vector<8x128xbf16>
    %c1_10 = arith.constant 1 : index
    %c0_11 = arith.constant 0 : index
    %c0_12 = arith.constant 0 : index
    %18 = vector.load %arg1[%c1_10, %c0_11, %c0_12] : memref<4x128x128xbf16, #tpu.memory_space<vmem>>, vector<1x128x128xbf16>
    %19 = vector.shape_cast %18 : vector<1x128x128xbf16> to vector<128x128xbf16>
    %cst_13 = arith.constant dense<0.000000e+00> : vector<8x128xf32>
    %20 = tpu.matmul %17, %19, %cst_13 {dimension_numbers = #tpu.dot_dimension_numbers<[1], [0], [0], [1], [0, 0, 1, 1], [], []>} : vector<8x128xbf16>, vector<128x128xbf16>, vector<8x128xf32> -> vector<8x128xf32>
    %cst_14 = arith.constant 0.000000e+00 : f32
    %21 = vector.broadcast %cst_14 : f32 to vector<8x128xf32>
    %22 = arith.maximumf %20, %21 : vector<8x128xf32>
    %23 = arith.truncf %22 : vector<8x128xf32> to vector<8x128xbf16>
    %c2_15 = arith.constant 2 : index
    %c0_16 = arith.constant 0 : index
    %c0_17 = arith.constant 0 : index
    %24 = vector.load %arg1[%c2_15, %c0_16, %c0_17] : memref<4x128x128xbf16, #tpu.memory_space<vmem>>, vector<1x128x128xbf16>
    %25 = vector.shape_cast %24 : vector<1x128x128xbf16> to vector<128x128xbf16>
    %cst_18 = arith.constant dense<0.000000e+00> : vector<8x128xf32>
    %26 = tpu.matmul %23, %25, %cst_18 {dimension_numbers = #tpu.dot_dimension_numbers<[1], [0], [0], [1], [0, 0, 1, 1], [], []>} : vector<8x128xbf16>, vector<128x128xbf16>, vector<8x128xf32> -> vector<8x128xf32>
    %cst_19 = arith.constant 0.000000e+00 : f32
    %27 = vector.broadcast %cst_19 : f32 to vector<8x128xf32>
    %28 = arith.maximumf %26, %27 : vector<8x128xf32>
    %29 = arith.truncf %28 : vector<8x128xf32> to vector<8x128xbf16>
    %c3 = arith.constant 3 : index
    %c0_20 = arith.constant 0 : index
    %c0_21 = arith.constant 0 : index
    %30 = vector.load %arg1[%c3, %c0_20, %c0_21] : memref<4x128x128xbf16, #tpu.memory_space<vmem>>, vector<1x128x128xbf16>
    %31 = vector.shape_cast %30 : vector<1x128x128xbf16> to vector<128x128xbf16>
    %cst_22 = arith.constant dense<0.000000e+00> : vector<8x128xf32>
    %32 = tpu.matmul %29, %31, %cst_22 {dimension_numbers = #tpu.dot_dimension_numbers<[1], [0], [0], [1], [0, 0, 1, 1], [], []>} : vector<8x128xbf16>, vector<128x128xbf16>, vector<8x128xf32> -> vector<8x128xf32>
    %cst_23 = arith.constant 0.000000e+00 : f32
    %33 = vector.broadcast %cst_23 : f32 to vector<8x128xf32>
    %34 = arith.maximumf %32, %33 : vector<8x128xf32>
    %35 = arith.truncf %34 : vector<8x128xf32> to vector<8x128xbf16>
    %c0_24 = arith.constant 0 : index
    %c0_25 = arith.constant 0 : index
    %c0_26 = arith.constant 0 : index
    %36 = vector.load %arg1[%c0_24, %c0_25, %c0_26] : memref<4x128x128xbf16, #tpu.memory_space<vmem>>, vector<1x128x128xbf16>
    %37 = vector.shape_cast %36 : vector<1x128x128xbf16> to vector<128x128xbf16>
    %cst_27 = arith.constant dense<0.000000e+00> : vector<8x128xf32>
    %38 = tpu.matmul %35, %37, %cst_27 {dimension_numbers = #tpu.dot_dimension_numbers<[1], [0], [0], [1], [0, 0, 1, 1], [], []>} : vector<8x128xbf16>, vector<128x128xbf16>, vector<8x128xf32> -> vector<8x128xf32>
    %cst_28 = arith.constant 0.000000e+00 : f32
    %39 = vector.broadcast %cst_28 : f32 to vector<8x128xf32>
    %40 = arith.maximumf %38, %39 : vector<8x128xf32>
    %41 = arith.truncf %40 : vector<8x128xf32> to vector<8x128xbf16>
    %c1_29 = arith.constant 1 : index
    %c0_30 = arith.constant 0 : index
    %c0_31 = arith.constant 0 : index
    %42 = vector.load %arg1[%c1_29, %c0_30, %c0_31] : memref<4x128x128xbf16, #tpu.memory_space<vmem>>, vector<1x128x128xbf16>
    %43 = vector.shape_cast %42 : vector<1x128x128xbf16> to vector<128x128xbf16>
    %cst_32 = arith.constant dense<0.000000e+00> : vector<8x128xf32>
    %44 = tpu.matmul %41, %43, %cst_32 {dimension_numbers = #tpu.dot_dimension_numbers<[1], [0], [0], [1], [0, 0, 1, 1], [], []>} : vector<8x128xbf16>, vector<128x128xbf16>, vector<8x128xf32> -> vector<8x128xf32>
    %cst_33 = arith.constant 0.000000e+00 : f32
    %45 = vector.broadcast %cst_33 : f32 to vector<8x128xf32>
    %46 = arith.maximumf %44, %45 : vector<8x128xf32>
    %47 = arith.truncf %46 : vector<8x128xf32> to vector<8x128xbf16>
    %c2_34 = arith.constant 2 : index
    %c0_35 = arith.constant 0 : index
    %c0_36 = arith.constant 0 : index
    %48 = vector.load %arg1[%c2_34, %c0_35, %c0_36] : memref<4x128x128xbf16, #tpu.memory_space<vmem>>, vector<1x128x128xbf16>
    %49 = vector.shape_cast %48 : vector<1x128x128xbf16> to vector<128x128xbf16>
    %cst_37 = arith.constant dense<0.000000e+00> : vector<8x128xf32>
    %50 = tpu.matmul %47, %49, %cst_37 {dimension_numbers = #tpu.dot_dimension_numbers<[1], [0], [0], [1], [0, 0, 1, 1], [], []>} : vector<8x128xbf16>, vector<128x128xbf16>, vector<8x128xf32> -> vector<8x128xf32>
    %cst_38 = arith.constant 0.000000e+00 : f32
    %51 = vector.broadcast %cst_38 : f32 to vector<8x128xf32>
    %52 = arith.maximumf %50, %51 : vector<8x128xf32>
    %53 = vector.broadcast %2 : vector<1x128xf32> to vector<8x128xf32>
    %54 = arith.mulf %52, %53 : vector<8x128xf32>
    %cst_39 = arith.constant dense<0.000000e+00> : vector<8xf32>
    %55 = vector.multi_reduction <add>, %54, %cst_39 [1] : vector<8x128xf32> to vector<8xf32>
    %56 = vector.shape_cast %55 : vector<8xf32> to vector<8x1xf32>
    %cst_40 = arith.constant 0.00999999977 : f32
    %57 = vector.broadcast %cst_40 : f32 to vector<8x1xf32>
    %58 = arith.maximumf %56, %57 : vector<8x1xf32>
    %59 = vector.shape_cast %58 : vector<8x1xf32> to vector<8x1xf32>
    %60 = vector.broadcast %59 : vector<8x1xf32> to vector<8x128xf32>
    %c0_41 = arith.constant 0 : index
    %c0_42 = arith.constant 0 : index
    %61 = vector.load %arg3[%c0_41, %c0_42] : memref<8x128xf32, #tpu.memory_space<vmem>>, vector<8x128xf32>
    tpu.vector_store %arg3[%c0_41, %c0_42], %60 {strides = array<i32>} : memref<8x128xf32, #tpu.memory_space<vmem>>, vector<8x128xf32>,
    return
  }
}

</mosaic_0001>

<bundles_post_ra>
// kernel: tpu_custom_call.1
= control target key start
LH: loop header
LB: loop body
LE: loop exit
PB: predicated region body
PF: predicated region fallthrough
CT: control target
= control target key end

     0   :  { %8 = vsyncpa [#allocation3], 0  ;;  %s1160_s0 = inlined_call_operand.vmem [shape: f32[8,1], index: 0, kind: input, shape index: {}]   ;;  %s1161_s1 = inlined_call_operand.hbm [shape: bf16[4,128,128], index: 1, kind: input, shape index: {}]   ;;  %s1162_s2 = inlined_call_operand.vmem [shape: f32[8,128], index: 2, kind: input, shape index: {}]   ;;  %s1163_s3 = inlined_call_operand.hbm [shape: f32[8,128], index: 3, kind: output, shape index: {}]  }
   0x1   :  { %9 = vsyncpa [#allocation4], 0  ;;  %s949_s12 = smov [#allocation2]  }
   0x2   :  { %s17_s13 = sshll.u32 %s949_s12, 4  ;;  %s18_s13 = int_to_ptr.vmem [resolvable:$true] %s17_s13 }
   0x3   :  { %s913_s14 = scalar_lea.vmem %s18_s13, 4096  ;;  %p918_p1 = scmp.lt.s32.totalorder %s18_s13, %s18_s13 }
   0x4   :  { %p914_p0 = scmp.ne.s32.totalorder %s18_s13, %s913_s14  ;;  %p919_p2 = scmp.lt.s32.totalorder %s913_s14, %s913_s14 }
   0x6   :  { %p920_p3 = por %p919_p2, %p918_p1 }
   0x8   :  { %p921_p4 = pnand %p920_p3, %p914_p0 }
   0xa   :  { %924 = shalt.err (!%p921_p4)
}
   0xb   :  { %s950_s15 = smov 64   ;;  %s951_s16 = smov 4  }
   0xc   :  { %23 = dma.hbm_to_vmem [thread:$0]  %s1161_s1, 4096, %s18_s13, [#allocation3], %s950_s15, %s950_s15, %s951_s16  }
   0xd   :  { %945 = dma.done.wait [#allocation3], 4096  }
   0xe   :  { %946 = vsyncadd [#allocation3], 4294963200  ;;  %v952_v0 = vmov 0   ;;  %v953_v1 = vmov 0.0   ;;  %v33_v2 = vld [vmem:[%s1160_s0] sm:$0xff]  ;;  %v984_v3 = vld [vmem:[#allocation2 + $0x38] sm:$0xff]  }
   0xf   :  { %872 = vset.pattern.permute.xlu0 %v952_v0  ;;  %725 = vmatprep.subr.bf16.mxu0 %v953_v1  ;;  %v987_v4 = vld [vmem:[#allocation2 + $0x30] sm:$0xff]   ;;  %vm954_vm0 = vmmov 0   ;;  %v995_v5 = vld [vmem:[#allocation2 + $0x28] sm:$0xff]   ;;  %v998_v6 = vld [vmem:[#allocation2 + $0x78] sm:$0xff]   ;;  %s955_s25 = smov [#allocation5]  }
  0x10   :  { %745 = vmatprep.subr.bf16.mxu1 %v953_v1  ;;  %36 = vperm.xlu0 %872, %v33_v2   ;;  %v1000_v7 = vld [vmem:[#allocation2 + $0x20] sm:$0xff]   ;;  %v1004_v8 = vld [vmem:[#allocation2 + $0x70] sm:$0xff]   ;;  %v1008_v9 = vld [vmem:[#allocation2 + $0x18] sm:$0xff]   ;;  %s618_s26 = sshll.u32 %s955_s25, 4  ;;  %s619_s26 = int_to_ptr.vmem [resolvable:$true] %s618_s26 }
  0x11   :  { %726 = vmatpush3.bf16.msra.mxu0 %v984_v3  ;;  %741 = vmatprep.mubr.msk.bf16.mxu0 %vm954_vm0, %v953_v1  ;;  %v1012_v10 = vld [vmem:[#allocation2 + $0x68] sm:$0xff]   ;;  %v1016_v11 = vld [vmem:[#allocation2 + $0x10] sm:$0xff]   ;;  %v1018_v12 = vld [vmem:[#allocation2 + $0x60] sm:$0xff]   ;;  %s925_s27 = scalar_lea.vmem %s619_s26, 128  ;;  %p930_p6 = scmp.lt.s32.totalorder %s619_s26, %s619_s26 }
  0x12   :  { %727 = vmatprep.subr.bf16.mxu0 %v953_v1  ;;  %761 = vmatprep.mubr.msk.bf16.mxu1 %vm954_vm0, %v953_v1  ;;  %v1024_v13 = vld [vmem:[#allocation2 + $0x8] sm:$0xff]   ;;  %v1026_v14 = vld [vmem:[#allocation2 + $0x58] sm:$0xff]   ;;  %v1033_v15 = vld [vmem:[#allocation2] sm:$0xff]   ;;  %p926_p5 = scmp.ne.s32.totalorder %s619_s26, %s925_s27  ;;  %p931_p7 = scmp.lt.s32.totalorder %s925_s27, %s925_s27 }
  0x13   :  { %746 = vmatpush3.bf16.msra.mxu1 %v998_v6  ;;  %v1036_v16 = vld [vmem:[#allocation2 + $0x50] sm:$0xff]   ;;  %v1042_v17 = vld [vmem:[#allocation2 + $0x48] sm:$0xff]   ;;  %v627_v18 = vld [vmem:[%s1162_s2] ss:$0 sm:$0xff] }
  0x14   :  { %747 = vmatprep.subr.bf16.mxu1 %v953_v1  ;;  %v628_v20 = vld [vmem:[%s1162_s2 + $0x1] ss:$0 sm:$0xff]  ;;  %v1060_v26 = vld [vmem:[#allocation2 + $0xb8] sm:$0xff]   ;;  %v1063_v27 = vld [vmem:[#allocation2 + $0xb0] sm:$0xff]   ;;  %p932_p8 = por %p931_p7, %p930_p6 }
  0x15   :  { %728 = vmatpush3.bf16.msra.mxu0 %v987_v4  ;;  %v1056_v25 = vld [vmem:[#allocation2 + $0x40] sm:$0xff]   ;;  %v1067_v28 = vld [vmem:[#allocation2 + $0xa8] sm:$0xff]   ;;  %v1075_v30 = vld [vmem:[#allocation2 + $0x98] sm:$0xff]  }
  0x16   :  { %729 = vmatprep.subr.bf16.mxu0 %v953_v1  ;;  %v1071_v29 = vld [vmem:[#allocation2 + $0xa0] sm:$0xff]   ;;  %v1079_v31 = vld [vmem:[#allocation2 + $0x90] sm:$0xff]   ;;  %v1083_v32 = vld [vmem:[#allocation2 + $0x88] sm:$0xff]   ;;  %p933_p9 = pnand %p932_p8, %p926_p5 }
  0x17   :  { %748 = vmatpush3.bf16.msra.mxu1 %v1004_v8  ;;  %v1090_v39 = vld [vmem:[#allocation2 + $0x80] sm:$0xff]   ;;  %v897_v40 = vld [vmem:[#allocation2 + $0xf8] sm:$0xff]   ;;  %v898_v41 = vld [vmem:[#allocation2 + $0xf0] sm:$0xff]  }
  0x18   :  { %749 = vmatprep.subr.bf16.mxu1 %v953_v1  ;;  %v899_v42 = vld [vmem:[#allocation2 + $0xe8] sm:$0xff]   ;;  %v900_v43 = vld [vmem:[#allocation2 + $0xe0] sm:$0xff]   ;;  %v901_v44 = vld [vmem:[#allocation2 + $0xd8] sm:$0xff]  }
  0x19   :  { %730 = vmatpush3.bf16.msra.mxu0 %v995_v5  ;;  %v902_v45 = vld [vmem:[#allocation2 + $0xd0] sm:$0xff]   ;;  %v903_v46 = vld [vmem:[#allocation2 + $0xc8] sm:$0xff]   ;;  %v904_v53 = vld [vmem:[#allocation2 + $0xc0] sm:$0xff]  }
  0x1a   :  { %731 = vmatprep.subr.bf16.mxu0 %v953_v1 }
  0x1b   :  { %750 = vmatpush3.bf16.msra.mxu1 %v1012_v10 }
  0x1c   :  { %751 = vmatprep.subr.bf16.mxu1 %v953_v1 }
  0x1d   :  { %732 = vmatpush3.bf16.msra.mxu0 %v1000_v7 }
  0x1e   :  { %733 = vmatprep.subr.bf16.mxu0 %v953_v1 }
  0x1f   :  { %752 = vmatpush3.bf16.msra.mxu1 %v1018_v12 }
  0x20   :  { %753 = vmatprep.subr.bf16.mxu1 %v953_v1 }
  0x21   :  { %734 = vmatpush3.bf16.msra.mxu0 %v1008_v9 }
  0x22   :  { %735 = vmatprep.subr.bf16.mxu0 %v953_v1 }
  0x23   :  { %754 = vmatpush3.bf16.msra.mxu1 %v1026_v14 }
  0x24   :  { %755 = vmatprep.subr.bf16.mxu1 %v953_v1 }
  0x25   :  { %736 = vmatpush3.bf16.msra.mxu0 %v1016_v11 }
  0x26   :  { %737 = vmatprep.subr.bf16.mxu0 %v953_v1 }
  0x27   :  { %756 = vmatpush3.bf16.msra.mxu1 %v1036_v16 }
  0x28   :  { %757 = vmatprep.subr.bf16.mxu1 %v953_v1 }
  0x29   :  { %738 = vmatpush3.bf16.msra.mxu0 %v1024_v13 }
  0x2a   :  { %739 = vmatprep.subr.bf16.mxu0 %v953_v1 }
  0x2b   :  { %758 = vmatpush3.bf16.msra.mxu1 %v1042_v17 }
  0x2c   :  { %759 = vmatprep.subr.bf16.mxu1 %v953_v1 }
  0x2d   :  { %740 = vmatpush3.bf16.msra.mxu0 %v1033_v15 }
  0x2e   :  { %765 = vmatprep.subr.bf16.mxu0 %v953_v1 }
  0x2f   :  { %760 = vmatpush3.bf16.msra.mxu1 %v1056_v25 }
  0x30   :  { %785 = vmatprep.subr.bf16.mxu1 %v953_v1 }
  0x8b   :  { %v37_v19 = vpop.permute.xlu0 %36 }
  0x8c   :  { %v43_v21 = vmul.f32 %v627_v18, %v37_v19 }
  0x8e   :  { %v48_v22 = vadd.f32 %v628_v20, %v43_v21 }
  0x90   :  { %v49_v23 = vmax.f32 %v48_v22, 0.0 }
  0x92   :  { %v50_v24 = vpack.c.bf16 %v49_v23, %v49_v23 }
  0x94   :  { %742 = vmatmul.mubr.bf16.vlgmr.msra.gmra.mxu0 %v50_v24 }
  0x95   :  { %781 = vmatprep.mubr.msk.bf16.mxu0 %vm954_vm0, %v953_v1  ;;  %766 = vmatpush3.bf16.msra.mxu0 %v1060_v26 }
  0x96   :  { %767 = vmatprep.subr.bf16.mxu0 %v953_v1 }
  0x99   :  { %768 = vmatpush3.bf16.msra.mxu0 %v1063_v27 }
  0x9a   :  { %769 = vmatprep.subr.bf16.mxu0 %v953_v1 }
  0x9d   :  { %770 = vmatpush3.bf16.msra.mxu0 %v1067_v28 }
  0x9e   :  { %771 = vmatprep.subr.bf16.mxu0 %v953_v1 }
  0xa1   :  { %772 = vmatpush3.bf16.msra.mxu0 %v1071_v29 }
  0xa2   :  { %773 = vmatprep.subr.bf16.mxu0 %v953_v1 }
  0xa5   :  { %774 = vmatpush3.bf16.msra.mxu0 %v1075_v30 }
  0xa6   :  { %775 = vmatprep.subr.bf16.mxu0 %v953_v1 }
  0xa9   :  { %776 = vmatpush3.bf16.msra.mxu0 %v1079_v31 }
  0xaa   :  { %777 = vmatprep.subr.bf16.mxu0 %v953_v1 }
  0xad   :  { %778 = vmatpush3.bf16.msra.mxu0 %v1083_v32 }
  0xae   :  { %779 = vmatprep.subr.bf16.mxu0 %v953_v1 }
  0xb1   :  { %780 = vmatpush3.bf16.msra.mxu0 %v1090_v39 }
  0xb2   :  { %805 = vmatprep.subr.bf16.mxu0 %v953_v1 }
 0x154   :  { %v149_v33 = vpop.f32.mrf.mxu0 }
 0x155   :  { %v155_v34 = vmax.f32 %v149_v33, 0.0 }
 0x156   :  { %v743_v35 = vpop.f32.mrf.mxu0 }
 0x157   :  { %v156_v36 = vpack.c.bf16 %v155_v34, %v155_v34 }
 0x158   :  { %v152_v37 = vpop.f32.mrf.mxu0 }
 0x159   :  { %762 = vmatmul.mubr.bf16.vlgmr.msra.gmra.mxu1 %v156_v36 }
 0x15a   :  { %v744_v38 = vpop.f32.mrf.mxu0  ;;  %801 = vmatprep.mubr.msk.bf16.mxu1 %vm954_vm0, %v953_v1  ;;  %786 = vmatpush3.bf16.msra.mxu1 %v897_v40 }
 0x15b   :  { %787 = vmatprep.subr.bf16.mxu1 %v953_v1 }
 0x15e   :  { %788 = vmatpush3.bf16.msra.mxu1 %v898_v41 }
 0x15f   :  { %789 = vmatprep.subr.bf16.mxu1 %v953_v1 }
 0x162   :  { %790 = vmatpush3.bf16.msra.mxu1 %v899_v42 }
 0x163   :  { %791 = vmatprep.subr.bf16.mxu1 %v953_v1 }
 0x166   :  { %792 = vmatpush3.bf16.msra.mxu1 %v900_v43 }
 0x167   :  { %793 = vmatprep.subr.bf16.mxu1 %v953_v1 }
 0x16a   :  { %794 = vmatpush3.bf16.msra.mxu1 %v901_v44 }
 0x16b   :  { %795 = vmatprep.subr.bf16.mxu1 %v953_v1 }
 0x16e   :  { %796 = vmatpush3.bf16.msra.mxu1 %v902_v45 }
 0x16f   :  { %797 = vmatprep.subr.bf16.mxu1 %v953_v1 }
 0x172   :  { %798 = vmatpush3.bf16.msra.mxu1 %v903_v46 }
 0x173   :  { %799 = vmatprep.subr.bf16.mxu1 %v953_v1 }
 0x176   :  { %800 = vmatpush3.bf16.msra.mxu1 %v904_v53 }
 0x177   :  { %825 = vmatprep.subr.bf16.mxu1 %v953_v1 }
 0x219   :  { %v256_v47 = vpop.f32.mrf.mxu1 }
 0x21a   :  { %v262_v48 = vmax.f32 %v256_v47, 0.0 }
 0x21b   :  { %v763_v49 = vpop.f32.mrf.mxu1 }
 0x21c   :  { %v263_v50 = vpack.c.bf16 %v262_v48, %v262_v48 }
 0x21d   :  { %v259_v51 = vpop.f32.mrf.mxu1 }
 0x21e   :  { %782 = vmatmul.mubr.bf16.vlgmr.msra.gmra.mxu0 %v263_v50 }
 0x21f   :  { %v764_v52 = vpop.f32.mrf.mxu1  ;;  %806 = vmatpush3.bf16.msra.mxu0 %v984_v3  ;;  %821 = vmatprep.mubr.msk.bf16.mxu0 %vm954_vm0, %v953_v1 }
 0x220   :  { %807 = vmatprep.subr.bf16.mxu0 %v953_v1 }
 0x223   :  { %808 = vmatpush3.bf16.msra.mxu0 %v987_v4 }
 0x224   :  { %809 = vmatprep.subr.bf16.mxu0 %v953_v1 }
 0x227   :  { %810 = vmatpush3.bf16.msra.mxu0 %v995_v5 }
 0x228   :  { %811 = vmatprep.subr.bf16.mxu0 %v953_v1 }
 0x22b   :  { %812 = vmatpush3.bf16.msra.mxu0 %v1000_v7 }
 0x22c   :  { %813 = vmatprep.subr.bf16.mxu0 %v953_v1 }
 0x22f   :  { %814 = vmatpush3.bf16.msra.mxu0 %v1008_v9 }
 0x230   :  { %815 = vmatprep.subr.bf16.mxu0 %v953_v1 }
 0x233   :  { %816 = vmatpush3.bf16.msra.mxu0 %v1016_v11 }
 0x234   :  { %817 = vmatprep.subr.bf16.mxu0 %v953_v1 }
 0x237   :  { %818 = vmatpush3.bf16.msra.mxu0 %v1024_v13 }
 0x238   :  { %819 = vmatprep.subr.bf16.mxu0 %v953_v1 }
 0x23b   :  { %820 = vmatpush3.bf16.msra.mxu0 %v1033_v15 }
 0x23c   :  { %845 = vmatprep.subr.bf16.mxu0 %v953_v1 }
 0x2de   :  { %v363_v54 = vpop.f32.mrf.mxu0 }
 0x2df   :  { %v369_v55 = vmax.f32 %v363_v54, 0.0 }
 0x2e0   :  { %v783_v56 = vpop.f32.mrf.mxu0 }
 0x2e1   :  { %v370_v57 = vpack.c.bf16 %v369_v55, %v369_v55 }
 0x2e2   :  { %v366_v58 = vpop.f32.mrf.mxu0 }
 0x2e3   :  { %802 = vmatmul.mubr.bf16.vlgmr.msra.gmra.mxu1 %v370_v57 }
 0x2e4   :  { %v784_v59 = vpop.f32.mrf.mxu0  ;;  %826 = vmatpush3.bf16.msra.mxu1 %v998_v6  ;;  %841 = vmatprep.mubr.msk.bf16.mxu1 %vm954_vm0, %v953_v1 }
 0x2e5   :  { %827 = vmatprep.subr.bf16.mxu1 %v953_v1 }
 0x2e8   :  { %828 = vmatpush3.bf16.msra.mxu1 %v1004_v8 }
 0x2e9   :  { %829 = vmatprep.subr.bf16.mxu1 %v953_v1 }
 0x2ec   :  { %830 = vmatpush3.bf16.msra.mxu1 %v1012_v10 }
 0x2ed   :  { %831 = vmatprep.subr.bf16.mxu1 %v953_v1 }
 0x2f0   :  { %832 = vmatpush3.bf16.msra.mxu1 %v1018_v12 }
 0x2f1   :  { %833 = vmatprep.subr.bf16.mxu1 %v953_v1 }
 0x2f4   :  { %834 = vmatpush3.bf16.msra.mxu1 %v1026_v14 }
 0x2f5   :  { %835 = vmatprep.subr.bf16.mxu1 %v953_v1 }
 0x2f8   :  { %836 = vmatpush3.bf16.msra.mxu1 %v1036_v16 }
 0x2f9   :  { %837 = vmatprep.subr.bf16.mxu1 %v953_v1 }
 0x2fc   :  { %838 = vmatpush3.bf16.msra.mxu1 %v1042_v17 }
 0x2fd   :  { %839 = vmatprep.subr.bf16.mxu1 %v953_v1 }
 0x300   :  { %840 = vmatpush3.bf16.msra.mxu1 %v1056_v25 }
 0x3a3   :  { %v470_v60 = vpop.f32.mrf.mxu1 }
 0x3a4   :  { %v476_v61 = vmax.f32 %v470_v60, 0.0 }
 0x3a5   :  { %v803_v62 = vpop.f32.mrf.mxu1 }
 0x3a6   :  { %v477_v63 = vpack.c.bf16 %v476_v61, %v476_v61 }
 0x3a7   :  { %v473_v0 = vpop.f32.mrf.mxu1 }
 0x3a8   :  { %822 = vmatmul.mubr.bf16.vlgmr.msra.gmra.mxu0 %v477_v63 }
 0x3a9   :  { %v804_v2 = vpop.f32.mrf.mxu1  ;;  %846 = vmatpush3.bf16.msra.mxu0 %v1060_v26  ;;  %861 = vmatprep.mubr.msk.bf16.mxu0 %vm954_vm0, %v953_v1 }
 0x3aa   :  { %847 = vmatprep.subr.bf16.mxu0 %v953_v1 }
 0x3ad   :  { %848 = vmatpush3.bf16.msra.mxu0 %v1063_v27 }
 0x3ae   :  { %849 = vmatprep.subr.bf16.mxu0 %v953_v1 }
 0x3b1   :  { %850 = vmatpush3.bf16.msra.mxu0 %v1067_v28 }
 0x3b2   :  { %851 = vmatprep.subr.bf16.mxu0 %v953_v1 }
 0x3b5   :  { %852 = vmatpush3.bf16.msra.mxu0 %v1071_v29 }
 0x3b6   :  { %853 = vmatprep.subr.bf16.mxu0 %v953_v1 }
 0x3b9   :  { %854 = vmatpush3.bf16.msra.mxu0 %v1075_v30 }
 0x3ba   :  { %855 = vmatprep.subr.bf16.mxu0 %v953_v1 }
 0x3bd   :  { %856 = vmatpush3.bf16.msra.mxu0 %v1079_v31 }
 0x3be   :  { %857 = vmatprep.subr.bf16.mxu0 %v953_v1 }
 0x3c1   :  { %858 = vmatpush3.bf16.msra.mxu0 %v1083_v32 }
 0x3c2   :  { %859 = vmatprep.subr.bf16.mxu0 %v953_v1  ;;  %v661_v1 = vld [vmem:[%s1162_s2 + $0x2] ss:$0 sm:$0xff] }
 0x3c5   :  { %860 = vmatpush3.bf16.msra.mxu0 %v1090_v39 }
 0x468   :  { %v512_v3 = vpop.f32.mrf.mxu0 }
 0x469   :  { %v518_v4 = vmax.f32 %v512_v3, 0.0 }
 0x46a   :  { %v823_v5 = vpop.f32.mrf.mxu0 }
 0x46b   :  { %v519_v6 = vpack.c.bf16 %v518_v4, %v518_v4 }
 0x46c   :  { %v515_v7 = vpop.f32.mrf.mxu0 }
 0x46d   :  { %842 = vmatmul.mubr.bf16.vlgmr.msra.gmra.mxu1 %v519_v6 }
 0x46e   :  { %v824_v8 = vpop.f32.mrf.mxu0 }
 0x52d   :  { %v554_v9 = vpop.f32.mrf.mxu1 }
 0x52e   :  { %v560_v10 = vmax.f32 %v554_v9, 0.0 }
 0x52f   :  { %v843_v11 = vpop.f32.mrf.mxu1 }
 0x530   :  { %v561_v12 = vpack.c.bf16 %v560_v10, %v560_v10 }
 0x531   :  { %v557_v13 = vpop.f32.mrf.mxu1 }
 0x532   :  { %862 = vmatmul.mubr.bf16.vlgmr.msra.gmra.mxu0 %v561_v12 }
 0x533   :  { %v844_v14 = vpop.f32.mrf.mxu1 }
 0x5f2   :  { %v596_v15 = vpop.f32.mrf.mxu0 }
 0x5f3   :  { %v602_v16 = vmax.f32 %v596_v15, 0.0 }
 0x5f4   :  { %v863_v17 = vpop.f32.mrf.mxu0 }
 0x5f5   :  { %v607_v18 = vmul.f32 %v661_v1, %v602_v16 }
 0x5f6   :  { %v599_v19 = vpop.f32.mrf.mxu0 }
 0x5f7   :  { %608 = vadd.xlane.f32.xlu0 %v607_v18 }
 0x5f8   :  { %v864_v20 = vpop.f32.mrf.mxu0 }
 0x680   :  { %v609_v21 = vpop.xlane.xlu0 %608 }
 0x681   :  { %v610_v22 = vmax.f32 %v609_v21, 0.01 }
 0x683   :  { %611 = vst [vmem:[#allocation5] sm:$0xff] %v610_v22 }
 0x684   :  { %936 = shalt.err (!%p933_p9)
}
 0x685   :  { %621 = dma.vmem_to_hbm [thread:$0]  %s619_s26, 128, %s1163_s3, [#allocation4]  }
 0x686   :  { %947 = dma.done.wait [#allocation4], 128  }
 0x687   :  { %948 = vsyncadd [#allocation4], 4294967168 }
 0x688   :  { %625 = vsyncpa [#allocation3], 1 }
 0x689   :  { %626 = vsyncpa [#allocation4], 1 }

</bundles_post_ra>
